<compile_context>
chip_gen: v6e
topology: v6e:2x2x1
jax: 0.10.0
libtpu: 0.0.40
codegen_flags: <defaults>
</compile_context>

<pallas_src>
import functools

import jax
import jax.numpy as jnp
from jax.experimental import pallas as pl
from jax.experimental.pallas import tpu as pltpu


def graph_conv_kernel(adj_ref, x_ref, w_ref, b_ref, out_ref, *scratch,
                      bt, n, tn, din, dout, linear_first):
    """One (batch-tile, row-tile) grid step.

    adj_ref: (Bt, Tn, N)    input dtype  adjacency rows of this tile
    x_ref:   (Bt, N, Din)   input dtype  all node features of this batch tile
    w_ref:   (Din, Dout)    input dtype  Linear weight (already transposed)
    b_ref:   (1, Dout)      input dtype  Linear bias
    out_ref: (Bt, Tn, Dout)
    scratch: (Bt, N, Dout)  input dtype  support scratch (linear_first only)
    """
    if linear_first:
        support_ref = scratch[0]

        # Linear stage: one fat (Bt*N, Din) @ (Din, Dout) matmul, computed once
        # per batch tile (row-tile axis is innermost) and reused by every row
        # tile of the adjacency stage.
        @pl.when(pl.program_id(1) == 0)
        def _():
            x2 = x_ref[...].reshape(bt * n, din)
            sup = jnp.dot(x2, w_ref[...], preferred_element_type=jnp.float32)
            sup = sup + b_ref[...]
            support_ref[...] = sup.reshape(bt, n, dout).astype(support_ref.dtype)

        # Aggregation stage: out[b] = adj[b] @ support[b] for these Tn rows.
        out_ref[...] = jnp.einsum(
            "bij,bjd->bid", adj_ref[...], support_ref[...],
            preferred_element_type=jnp.float32,
        ).astype(out_ref.dtype)
    else:
        # Din < Dout: exact identity  out = (adj @ X) @ W + rowsum(adj) * b
        # so the adjacency contraction width is Din instead of Dout.
        agg = jnp.einsum(
            "bij,bjd->bid", adj_ref[...], x_ref[...],
            preferred_element_type=jnp.float32,
        )                                                    # (Bt, Tn, Din) f32
        agg2 = agg.astype(x_ref.dtype).reshape(bt * tn, din)
        out2 = jnp.dot(agg2, w_ref[...], preferred_element_type=jnp.float32)
        rows = jnp.sum(adj_ref[...].astype(jnp.float32), axis=-1, keepdims=True)
        out3 = out2.reshape(bt, tn, dout) + rows * b_ref[...].astype(jnp.float32)
        out_ref[...] = out3.astype(out_ref.dtype)


def _vmem_capacity_bytes():
    try:
        return int(pltpu.get_tpu_info().vmem_capacity_bytes)
    except Exception:
        return 64 * 1024 * 1024  # conservative fallback (v7x per-core VMEM)


def _choose_tiles(B, N, Din, Dout, dmid, itemsize, row_align, budget):
    """Largest (Bt, Tn) block whose (double-buffered) footprint fits `budget`,
    preferring >= 4 grid steps so the BlockSpec pipeline overlaps DMA with
    compute and the v7x dual TensorCore gets >= 2 parallel steps."""
    tn_opts = [t for t in range(row_align, N + 1, row_align) if N % t == 0]
    bt_opts = [b for b in range(1, B + 1) if B % b == 0]

    def footprint(bt, tn):
        blocks = bt * tn * N + bt * N * Din + bt * tn * Dout   # adj + x + out
        fixed = Din * Dout + Dout                              # weight + bias
        scratch = bt * N * dmid                                # support / agg
        return (2 * (blocks + fixed) + scratch) * itemsize

    cands = []
    for bt in bt_opts:
        for tn in tn_opts:
            f = footprint(bt, tn)
            if f <= budget:
                cands.append((bt, tn, f, (B // bt) * (N // tn)))
    if not cands:
        # TODO(synk): tile the N/Din contraction (f32 accumulator + pl.when
        # init/finalize, contraction axis last & "arbitrary") for graphs whose
        # smallest (Bt=1, Tn=row_align) block still exceeds the VMEM budget.
        raise ValueError(
            "GraphConvolution: even the smallest (Bt=1, Tn=%d) block exceeds "
            "the VMEM budget of %d bytes; contraction tiling is not implemented."
            % (row_align, budget))

    max_steps = max(c[3] for c in cands)
    target_steps = min(4, max_steps)
    good = [c for c in cands if c[3] >= target_steps]
    good.sort(key=lambda c: (c[2], c[3], c[0]))   # biggest block, then more steps
    bt, tn, _, _ = good[-1]
    return bt, tn


def graph_convolution(adjacency, input_feature, weight_t, bias, *, bt=None, tn=None):
    """adjacency: (B, N, N); input_feature: (B*N, Din);
    weight_t: (Din, Dout) (= torch Linear weight transposed); bias: (Dout,).
    Returns (B*N, Dout)."""
    B, N, N2 = adjacency.shape
    assert N == N2, "adjacency must be square per batch"
    BN, Din = input_feature.shape
    assert BN == B * N, "input_feature rows must equal B * N"
    Dout = weight_t.shape[1]

    dtype = input_feature.dtype
    itemsize = jnp.dtype(dtype).itemsize
    adjacency = adjacency.astype(dtype)
    weight_t = weight_t.astype(dtype)
    bias = bias.astype(dtype)

    # Run the cheaper contraction width through the adjacency stage.
    linear_first = Dout <= Din
    dmid = Dout if linear_first else Din

    # Pad N up to the sublane-tile multiple so in-kernel (Bt,N,D)<->(Bt*N,D)
    # reshapes are layout-free.  Padded adjacency rows/columns are zero, so the
    # extra output rows are exactly zero and sliced off below.
    row_align = {1: 32, 2: 16, 4: 8}.get(itemsize, 8)
    Np = ((N + row_align - 1) // row_align) * row_align
    x3 = input_feature.reshape(B, N, Din)
    if Np != N:
        adjacency = jnp.pad(adjacency, ((0, 0), (0, Np - N), (0, Np - N)))
        x3 = jnp.pad(x3, ((0, 0), (0, Np - N), (0, 0)))
    b2 = bias.reshape(1, Dout)

    # Generation- and dtype-aware tile sizing / VMEM limits.
    vmem_cap = _vmem_capacity_bytes()
    budget = int(vmem_cap * 0.30)        # ~19 MiB on v7x, ~38 MiB on v5e/v6e
    vmem_limit = int(vmem_cap * 0.75)    # ~48 MiB on v7x, ~96 MiB on v5e/v6e
    if bt is None or tn is None:
        bt_auto, tn_auto = _choose_tiles(B, Np, Din, Dout, dmid, itemsize,
                                         row_align, budget)
        bt = bt_auto if bt is None else bt
        tn = tn_auto if tn is None else tn

    grid = (B // bt, Np // tn)
    kernel = functools.partial(
        graph_conv_kernel, bt=bt, n=Np, tn=tn, din=Din, dout=Dout,
        linear_first=linear_first)
    scratch_shapes = [pltpu.VMEM((bt, Np, dmid), dtype)] if linear_first else []

    # Linear-first needs the scratch reused across row tiles -> that axis is
    # "arbitrary"; adjacency-first has no cross-step state -> fully parallel.
    dim_semantics = ("parallel", "arbitrary") if linear_first else ("parallel", "parallel")

    flops = 2 * B * Np * Din * Dout + 2 * B * Np * Np * dmid
    bytes_accessed = itemsize * (
        B * Np * Np + B * Np * Din + B * Np * Dout + Din * Dout + Dout)

    out3 = pl.pallas_call(
        kernel,
        out_shape=jax.ShapeDtypeStruct((B, Np, Dout), dtype),
        grid_spec=pltpu.PrefetchScalarGridSpec(
            num_scalar_prefetch=0,
            grid=grid,
            in_specs=[
                pl.BlockSpec((bt, tn, Np), lambda b, t: (b, t, 0)),   # adjacency rows
                pl.BlockSpec((bt, Np, Din), lambda b, t: (b, 0, 0)),  # node features
                pl.BlockSpec((Din, Dout), lambda b, t: (0, 0)),       # weight (grid-invariant)
                pl.BlockSpec((1, Dout), lambda b, t: (0, 0)),         # bias   (grid-invariant)
            ],
            out_specs=pl.BlockSpec((bt, tn, Dout), lambda b, t: (b, t, 0)),
            scratch_shapes=scratch_shapes,
        ),
        compiler_params=pltpu.CompilerParams(
            dimension_semantics=dim_semantics,
            vmem_limit_bytes=vmem_limit,
        ),
        cost_estimate=pl.CostEstimate(
            flops=flops, transcendentals=0, bytes_accessed=bytes_accessed),
    )(adjacency, x3, weight_t, b2)

    if Np != N:
        out3 = out3[:, :N, :]
    return out3.reshape(B * N, Dout)


def _reference(adjacency, input_feature, weight_t, bias, B, N, Dout):
    sup = (input_feature.astype(jnp.float32) @ weight_t.astype(jnp.float32)
           + bias.astype(jnp.float32)).reshape(B, N, Dout)
    out = jnp.einsum("bij,bjd->bid", adjacency.astype(jnp.float32), sup)
    return out.reshape(B * N, Dout)


if __name__ == "__main__":
    key = jax.random.PRNGKey(0)

    configs = [
        # (B, N, Din, Dout, dtype, tol) -- exercises both orderings + bf16 scratch
        (2, 16, 32, 32, jnp.float32, 3e-2),   # Dout <= Din  -> linear-first
        (2, 16, 16, 48, jnp.float32, 3e-2),   # Din  <  Dout -> adjacency-first
        (2, 32, 32, 32, jnp.bfloat16, 2e-1),  # bf16 scratch / bf16 MXU path
    ]

    for (B, N, Din, Dout, dtype, tol) in configs:
        key, k_adj, k_x, k_w, k_b = jax.random.split(key, 5)
        adjacency = jax.random.uniform(k_adj, (B, N, N), dtype=jnp.float32).astype(dtype)
        input_feature = jax.random.normal(k_x, (B * N, Din), dtype=jnp.float32).astype(dtype)

        # Deterministic Linear params (torch nn.Linear-style uniform init bounds).
        bound = 1.0 / (Din ** 0.5)
        weight_t = jax.random.uniform(
            k_w, (Din, Dout), minval=-bound, maxval=bound, dtype=jnp.float32).astype(dtype)
        bias = jax.random.uniform(
            k_b, (Dout,), minval=-bound, maxval=bound, dtype=jnp.float32).astype(dtype)

        out = graph_convolution(adjacency, input_feature, weight_t, bias)
        out = jax.block_until_ready(out)

        ref = _reference(adjacency, input_feature, weight_t, bias, B, N, Dout)
        err = float(jnp.max(jnp.abs(out.astype(jnp.float32) - ref)))
        assert out.shape == (B * N, Dout), out.shape
        assert err <= tol, (B, N, Din, Dout, str(dtype), err)

    print("KERNEL_OK")
</pallas_src>

<mosaic_0001>
module attributes {stable_mosaic.version = 11 : i64} {
  func.func @graph_conv_kernel(%arg0: i32, %arg1: i32, %arg2: memref<1x8x16xf32, #tpu.memory_space<vmem>>, %arg3: memref<1x16x32xf32, #tpu.memory_space<vmem>>, %arg4: memref<32x32xf32, #tpu.memory_space<vmem>>, %arg5: memref<1x32xf32, #tpu.memory_space<vmem>>, %arg6: memref<1x8x32xf32, #tpu.memory_space<vmem>>, %arg7: memref<1x16x32xf32, #tpu.memory_space<vmem>>) attributes {dimension_semantics = [#tpu.dimension_semantics<parallel>, #tpu.dimension_semantics<arbitrary>], iteration_bounds = array<i64: 2, 2>, scalar_prefetch = 0 : i64, scratch_operands = 1 : i64, tpu.core_type = #tpu.core_type<tc>, window_params = [{transform_indices = @transform_0, window_bounds = array<i64: 1, 8, 16>}, {transform_indices = @transform_1, window_bounds = array<i64: 1, 16, 32>}, {pipeline_mode = #tpu.pipeline_mode<synchronous>, transform_indices = @transform_2, window_bounds = array<i64: 32, 32>}, {pipeline_mode = #tpu.pipeline_mode<synchronous>, transform_indices = @transform_3, window_bounds = array<i64: 1, 32>}, {transform_indices = @transform_4, window_bounds = array<i64: 1, 8, 32>}]} {
    %c0_i32 = arith.constant 0 : i32
    %0 = arith.cmpi eq, %arg1, %c0_i32 : i32
    %1 = arith.extui %0 : i1 to i32
    %c0_i32_0 = arith.constant 0 : i32
    %2 = arith.cmpi ne, %1, %c0_i32_0 : i32
    scf.if %2 {
      %c0_9 = arith.constant 0 : index
      %c0_10 = arith.constant 0 : index
      %c0_11 = arith.constant 0 : index
      %7 = vector.load %arg3[%c0_9, %c0_10, %c0_11] : memref<1x16x32xf32, #tpu.memory_space<vmem>>, vector<1x16x32xf32>
      %8 = vector.shape_cast %7 : vector<1x16x32xf32> to vector<16x32xf32>
      %c0_12 = arith.constant 0 : index
      %c0_13 = arith.constant 0 : index
      %9 = vector.load %arg4[%c0_12, %c0_13] : memref<32x32xf32, #tpu.memory_space<vmem>>, vector<32x32xf32>
      %cst_14 = arith.constant dense<0.000000e+00> : vector<16x32xf32>
      %10 = tpu.matmul %8, %9, %cst_14 {dimension_numbers = #tpu.dot_dimension_numbers<[1], [0], [0], [1], [0, 0, 1, 1], [], []>} : vector<16x32xf32>, vector<32x32xf32>, vector<16x32xf32> -> vector<16x32xf32>
      %c0_15 = arith.constant 0 : index
      %c0_16 = arith.constant 0 : index
      %11 = vector.load %arg5[%c0_15, %c0_16] : memref<1x32xf32, #tpu.memory_space<vmem>>, vector<1x32xf32>
      %12 = vector.broadcast %11 : vector<1x32xf32> to vector<16x32xf32>
      %13 = arith.addf %10, %12 : vector<16x32xf32>
      %14 = vector.shape_cast %13 : vector<16x32xf32> to vector<1x16x32xf32>
      %c0_17 = arith.constant 0 : index
      %c0_18 = arith.constant 0 : index
      %c0_19 = arith.constant 0 : index
      %15 = vector.load %arg7[%c0_17, %c0_18, %c0_19] : memref<1x16x32xf32, #tpu.memory_space<vmem>>, vector<1x16x32xf32>
      tpu.vector_store %arg7[%c0_17, %c0_18, %c0_19], %14 {strides = array<i32>} : memref<1x16x32xf32, #tpu.memory_space<vmem>>, vector<1x16x32xf32>,
    } else {
    }
    %c0 = arith.constant 0 : index
    %c0_1 = arith.constant 0 : index
    %c0_2 = arith.constant 0 : index
    %3 = vector.load %arg2[%c0, %c0_1, %c0_2] : memref<1x8x16xf32, #tpu.memory_space<vmem>>, vector<1x8x16xf32>
    %c0_3 = arith.constant 0 : index
    %c0_4 = arith.constant 0 : index
    %c0_5 = arith.constant 0 : index
    %4 = vector.load %arg7[%c0_3, %c0_4, %c0_5] : memref<1x16x32xf32, #tpu.memory_space<vmem>>, vector<1x16x32xf32>
    "tpu.trace_start"() <{level = 10 : i32, message = "bij,bjd->bid"}> : () -> ()
    %cst = arith.constant dense<0.000000e+00> : vector<1x8x32xf32>
    %5 = tpu.matmul %3, %4, %cst {dimension_numbers = #tpu.dot_dimension_numbers<[2], [1], [1], [2], [0, 0, 0, 1, 1, 2], [0], [0]>} : vector<1x8x16xf32>, vector<1x16x32xf32>, vector<1x8x32xf32> -> vector<1x8x32xf32>
    "tpu.trace_stop"() : () -> ()
    %c0_6 = arith.constant 0 : index
    %c0_7 = arith.constant 0 : index
    %c0_8 = arith.constant 0 : index
    %6 = vector.load %arg6[%c0_6, %c0_7, %c0_8] : memref<1x8x32xf32, #tpu.memory_space<vmem>>, vector<1x8x32xf32>
    tpu.vector_store %arg6[%c0_6, %c0_7, %c0_8], %5 {strides = array<i32>} : memref<1x8x32xf32, #tpu.memory_space<vmem>>, vector<1x8x32xf32>,
    return
  }
  func.func @transform_0(%arg0: i32, %arg1: i32) -> (i32, i32, i32) {
    %c0_i32 = arith.constant 0 : i32
    %c0_i32_0 = arith.constant 0 : i32
    return %arg0, %arg1, %c0_i32 : i32, i32, i32
  }
  func.func @transform_1(%arg0: i32, %arg1: i32) -> (i32, i32, i32) {
    %c0_i32 = arith.constant 0 : i32
    %c0_i32_0 = arith.constant 0 : i32
    %c0_i32_1 = arith.constant 0 : i32
    return %arg0, %c0_i32, %c0_i32_0 : i32, i32, i32
  }
  func.func @transform_2(%arg0: i32, %arg1: i32) -> (i32, i32) {
    %c0_i32 = arith.constant 0 : i32
    %c0_i32_0 = arith.constant 0 : i32
    %c0_i32_1 = arith.constant 0 : i32
    return %c0_i32, %c0_i32_0 : i32, i32
  }
  func.func @transform_3(%arg0: i32, %arg1: i32) -> (i32, i32) {
    %c0_i32 = arith.constant 0 : i32
    %c0_i32_0 = arith.constant 0 : i32
    %c0_i32_1 = arith.constant 0 : i32
    return %c0_i32, %c0_i32_0 : i32, i32
  }
  func.func @transform_4(%arg0: i32, %arg1: i32) -> (i32, i32, i32) {
    %c0_i32 = arith.constant 0 : i32
    %c0_i32_0 = arith.constant 0 : i32
    return %arg0, %arg1, %c0_i32 : i32, i32, i32
  }
}

</mosaic_0001>

<bundles_post_ra>
// kernel: tpu_custom_call.1
= control target key start
LH: loop header
LB: loop body
LE: loop exit
PB: predicated region body
PF: predicated region fallthrough
CT: control target
= control target key end

     0   :  { %s1300_s0 = inlined_call_operand.hbm [shape: f32[2,16,16], index: 0, kind: input, shape index: {}]   ;;  %s1301_s1 = inlined_call_operand.hbm [shape: f32[2,16,32], index: 1, kind: input, shape index: {}]   ;;  %s1302_s2 = inlined_call_operand.hbm [shape: f32[32,32], index: 2, kind: input, shape index: {}]   ;;  %s1303_s3 = inlined_call_operand.vmem [shape: f32[1,32], index: 3, kind: input, shape index: {}]   ;;  %s1304_s4 = inlined_call_operand.hbm [shape: f32[2,16,32], index: 4, kind: output, shape index: {}]  }
   0x1   :  { %1316 = sst [smem:[#allocation21_spill]] %s1300_s0 }
   0x2   :  { %1317 = sst [smem:[#allocation22_spill]] %s1302_s2 }
   0x3   :  { %1318 = sst [smem:[#allocation23_spill]] %s1303_s3 }
   0x4   :  { %1319 = sst [smem:[#allocation24_spill]] %s1304_s4 }
   0x5   :  { %9 = vsyncpa [#allocation4], 0 }
   0x6   :  { %11 = vsyncpa [#allocation4 + $0x1], 0 }
   0x7   :  { %12 = vsyncpa [#allocation7], 0 }
   0x8   :  { %14 = vsyncpa [#allocation7 + $0x1], 0 }
   0x9   :  { %15 = vsyncpa [#allocation5], 0 }
   0xa   :  { %17 = vsyncpa [#allocation5 + $0x1], 0  ;;  %s1019_s15 = smov 0   ;;  %s1021_s16 = smov 0  }
   0xb   :  { %s1023_s17 = smov 0   ;;  %s1025_s18 = smov 0  }
   0xc   :  { %s1027_s19 = smov 0   ;;  %s1029_s20 = smov 0  }
   0xd   :  { %s1031_s21 = smov 0   ;;  %s1033_s22 = smov 0  }
   0xe   :  { %s1035_s23 = smov 0   ;;  %s1037_s24 = smov 0  }
   0xf   :  { %s1039_s25 = smov 0  }
  0x10 LB: > { %1320 = sst [smem:[#allocation14_spill]] %s972_s22  ;;  %s1073_s26 = sadd.s32 4294967295, %s984_s25   ;;  %s984_s25 = sphi %s1039_s25, %s23_s25   ;;  %s980_s24 = sphi %s1037_s24, %s1361_s24   ;;  %s976_s23 = sphi %s1035_s23, %s1352_s23   ;;  %s972_s22 = sphi %s1033_s22, %s1360_s22   ;;  %s968_s21 = sphi %s1031_s21, %s1351_s21   ;;  %s964_s20 = sphi %s1029_s20, %s1359_s20   ;;  %s960_s19 = sphi %s1027_s19, %s1358_s19   ;;  %s956_s18 = sphi %s1025_s18, %s1357_s18   ;;  %s952_s17 = sphi %s1023_s17, %s1356_s17   ;;  %s948_s16 = sphi %s1021_s16, %s1355_s16   ;;  %s944_s15 = sphi %s1019_s15, %s1354_s15  }
  0x11   : > { %1321 = sst [smem:[#allocation15_spill]] %s976_s23  ;;  %p83_p0 = scmp.ne.s32.totalorder %s948_s16, %s944_s15 }
  0x12   : > { %p1309_p1 = scmp.eq.s32.totalorder %s1073_s26, 0  ;;  %p600_p2 = scmp.ge.s32.totalorder %s984_s25, 1 }
  0x13   : > { %p164_p3 = scmp.lt.s32.totalorder %s984_s25, 5  ;;  %s986_s29 = smov [#allocation8]  }
  0x14   : > { %p1081_p4 = por %p83_p0, %p1309_p1  ;;  %s176_s30 = sshll.u32 %s986_s29, 4  ;;  %s177_s30 = int_to_ptr.vmem [resolvable:$true] %s176_s30 }
  0x15   : > { %p1085_p5 = pnand %p600_p2, %p164_p3  ;;  %s785_s5 = scalar_lea.vmem %s177_s30, 512 }
  0x16   : > { %s1322_s27 = scalar_select %p1081_p4, 1, 0 }
  0x17   : > { %p662_p6 = pneg %p1085_p5  ;;  %p786_p9 = scmp.ne.s32.totalorder %s177_s30, %s785_s5 }
  0x18   : > { %p793_p12 = scmp.lt.s32.totalorder %s177_s30, %s177_s30  ;;  %p794_p13 = scmp.lt.s32.totalorder %s785_s5, %s785_s5 }
  0x19   : > { %p663_p7 = pnand %p662_p6, %p1309_p1 }
  0x1a   : > { %p795_p0 = por %p794_p13, %p793_p12 }
  0x1b   : > { %p776_p8 = pneg %p663_p7 }
  0x1d   : > { %p788_p10 = pnand %p786_p9, %p776_p8 }
  0x1f   : > { %p789_p11 = pneg %p788_p10 }
  0x21   : > { %p796_p2 = pnand %p795_p0, %p789_p11 }
  0x23   : > { %799 = shalt.err (!%p796_p2)
}
  0x24   : > { %s1305_s6 = smov 128   ;;  %s1306_s7 = smov 8  }
  0x25   : > { %s1324_s2 = sld [smem:[#allocation22_spill]]  ;;  %s599_s10 = sadd.s32 4294967294, %s984_s25  }
  0x26   : > { %s32_s11 = sadd.s32 1, %s976_s23  ;;  %s35_s12 = sadd.s32 1, %s980_s24 }
  0x27   : > { %p33_p3 = scmp.ge.s32.totalorder %s32_s11, 2  ;;  %s44_s13 = sadd.s32 1, %s964_s20 }
  0x28   : > { %p51_p6 = scmp.ne.s32.totalorder %s964_s20, %s960_s19  ;;  %p52_p8 = scmp.eq.s32.totalorder %s984_s25, 0 }
  0x29   : > { %s1363_s11 = smov (%p33_p3, %s32_s11), 0  ;;  %s1365_s12 = smov (!%p33_p3, %s35_s12), %s980_s24 }
  0x2a   : > { %1325 = sst [smem:[#allocation16_spill]] %s1363_s11  ;;  %s40_s14 = ssub.s32 %s976_s23, %s1363_s11 }
  0x2b   : > { %665 = dma.hbm_to_vmem [thread:$0]  (!%p663_p7), %s1324_s2, 512, %s177_s30, [#allocation7], %s1305_s6, %s1305_s6, %s1306_s7  }
  0x2c   : > { %p1114_p7 = por %p52_p8, %p51_p6  ;;  %p37_p9 = scmp.ge.s32.totalorder %s1365_s12, 2 }
  0x2d   : > { %p57_p10 = scmp.ne.s32.totalorder %s960_s19, %s956_s18  ;;  %s70_s29 = sadd.s32 1, %s952_s17 }
  0x2e   : > { %p77_p11 = scmp.ne.s32.totalorder %s952_s17, %s948_s16  ;;  %s1367_s12 = smov (%p37_p9, %s1365_s12), 0 }
  0x2f   : > { %1327 = sst [smem:[#allocation17_spill]] %s1367_s12  ;;  %p1130_p12 = por %p1309_p1, %p57_p10 }
  0x30   : > { %p1134_p13 = por %p77_p11, %p52_p8  ;;  %s39_s8 = ssub.s32 %s980_s24, %s1367_s12 }
  0x31   : > { %p151_p0 = scmp.eq.s32.totalorder %s1073_s26, 3  ;;  %s41_s9 = sor.u32 %s40_s14, %s39_s8 }
  0x32   : > { %p68_p2 = scmp.eq.s32.totalorder %s39_s8, 0  ;;  %p42_p3 = scmp.eq.s32.totalorder %s41_s9, 0 }
  0x33   : > { %p1144_p9 = por %p151_p0, %p51_p6  ;;  %p157_p8 = scmp.eq.s32.totalorder %s599_s10, 3 }
  0x34   : > { %s1149_s7 = scalar_select %p68_p2, %s952_s17, %s70_s29  }
  0x35   : > { %s1330_s6 = scalar_select %p1144_p9, 1, 0 }
  0x36   : > { %1332 = sst [smem:[#allocation19_spill]] %s1149_s7  ;;  %p678_p11 = scmp.lt.s32.totalorder %s984_s25, 4 }
  0x37   : > { %1331 = sst [smem:[#allocation18_spill]] %s1330_s6  ;;  %s193_s11 = sand.u32 1, %s964_s20  }
  0x38   : > { %s1152_s2 = scalar_select %p42_p3, %s964_s20, %s44_s13  }
  0x39   : > { %s604_s12 = sshll.u32 %s980_s24, 1  ;;  %p1160_p1 = por %p157_p8, %p57_p10 }
  0x3a   : > { %1333 = sst [smem:[#allocation20_spill]] %s1152_s2  ;;  %s603_s8 = sshll.u32 %s193_s11, 3 }
  0x3b   : > { %s1334_s14 = scalar_select %p1160_p1, 1, 0 }
  0x3c   : > { %s202_s9 = sadd.s32 %s976_s23, %s604_s12  ;;  %s1335_s0 = sld [smem:[#allocation21_spill]] }
  0x3d   : > { %s605_s4 = sshll.u32 %s202_s9, 7  ;;  %s197_s7 = scalar_lea.vmem [#allocation3], %s603_s8 }
  0x3e   : > { %s206_s3 = sshll.u32 %s197_s7, 4  ;;  %p1170_p6 = pnand %p678_p11, %p1114_p7  ;;  %s207_s3 = int_to_ptr.vmem [resolvable:$true] %s206_s3 }
  0x3f   : > { %p1176_p10 = pnand %p678_p11, %p1134_p13  ;;  %s213_s12 = sand.u32 1, %s984_s25  }
  0x40   : > { %s194_s9 = scalar_lea.sflag [#allocation4], %s193_s11  ;;  %p802_p0 = pneg %p1170_p6 }
  0x41   : > { %s813_s22 = scalar_lea.vmem %s207_s3, 128 }
  0x42   : > { %s204_s29 = scalar_lea.hbm %s1335_s0, %s605_s4  ;;  %p814_p2 = scmp.ne.s32.totalorder %s207_s3, %s813_s22 }
  0x43   : > { %s989_s4 = smov [#allocation3]  }
  0x44   : > { %p816_p3 = pnand %p814_p2, %p802_p0  ;;  %s818_s6 = sshll.u32 %s989_s4, 4  ;;  %s819_s6 = int_to_ptr.vmem [resolvable:$false] %s818_s6 }
  0x45   : > { %s820_s7 = scalar_lea.vmem %s819_s6, 256  ;;  %p821_p7 = scmp.lt.s32.totalorder %s207_s3, %s819_s6 }
  0x46   : > { %p817_p8 = pneg %p816_p3  ;;  %p822_p1 = scmp.lt.s32.totalorder %s820_s7, %s813_s22 }
  0x48   : > { %p823_p9 = por %p822_p1, %p821_p7 }
  0x4a   : > { %p824_p4 = pnand %p823_p9, %p817_p8 }
  0x4c   : > { %827 = shalt.err (!%p824_p4)
}
  0x4d   : > { %669 = dma.hbm_to_vmem [thread:$0]  (!%p1170_p6), %s204_s29, 128, %s207_s3, %s194_s9  }
  0x4e   : > { %s215_s11 = sand.u32 1, %s952_s17   ;;  %s624_s5 = sshll.u32 %s980_s24, 8 }
  0x4f   : > { %s606_s15 = sshll.u32 %s215_s11, 4  ;;  %s223_s4 = scalar_lea.hbm %s1301_s1, %s624_s5 }
  0x50   : > { %s217_s23 = scalar_lea.vmem [#allocation6], %s606_s15  ;;  %s214_s22 = scalar_lea.sflag [#allocation7], %s213_s12 }
  0x51   : > { %s224_s2 = sshll.u32 %s217_s23, 4  ;;  %p830_p1 = pneg %p1176_p10  ;;  %s225_s2 = int_to_ptr.vmem [resolvable:$true] %s224_s2 }
  0x52   : > { %s841_s6 = scalar_lea.vmem %s225_s2, 256  ;;  %s990_s10 = smov [#allocation6]  }
  0x53   : > { %p842_p4 = scmp.ne.s32.totalorder %s225_s2, %s841_s6  ;;  %s846_s7 = sshll.u32 %s990_s10, 4  ;;  %s847_s7 = int_to_ptr.vmem [resolvable:$false] %s846_s7 }
  0x54   : > { %s848_s3 = scalar_lea.vmem %s847_s7, 512  ;;  %p849_p11 = scmp.lt.s32.totalorder %s225_s2, %s847_s7 }
  0x55   : > { %p844_p13 = pnand %p842_p4, %p830_p1  ;;  %p850_p6 = scmp.lt.s32.totalorder %s848_s3, %s841_s6 }
  0x57   : > { %p845_p9 = pneg %p844_p13  ;;  %p851_p0 = por %p850_p6, %p849_p11 }
  0x59   : > { %p852_p2 = pnand %p851_p0, %p845_p9 }
  0x5b   : > { %855 = shalt.err (!%p852_p2)
}
  0x5c   : > { %s1338_s0 = smov 8   ;;  %s1339_s23 = smov 128  }
  0x5d   : > { %672 = dma.hbm_to_vmem [thread:$0]  (!%p1176_p10), %s223_s4, 256, %s225_s2, %s214_s22, %s1339_s23, %s1339_s23, %s1338_s0  }
  0x5e   : > { %236 = sbr.rel (%p1085_p5) target bundleno = 537 (0x219), region = 36  ;;  %s1200_s29 = sand.u32 (!%p1085_p5), 1, %s960_s19  }
  0x5f   : > { %s610_s12 = sshll.u32 (!%p1085_p5), %s1200_s29, 3  ;;  %s239_s9 = scalar_lea.sflag (!%p1085_p5), [#allocation4], %s1200_s29 }
  0x60   : > { %s1204_s11 = scalar_lea.vmem (!%p1085_p5), [#allocation3], %s610_s12 }
  0x63   : > { %927 = dma.done.wait (%p1130_p12), %s239_s9, 128  }
  0x64   : > { %929 = vsyncadd (%p1130_p12), %s239_s9, 4294967168  ;;  %s247_s2 = sand.u32 1, %s1073_s26   ;;  %s249_s28 = sand.u32 1, %s948_s16  }
  0x65   : > { %s611_s13 = sshll.u32 %s249_s28, 4  ;;  %s248_s15 = scalar_lea.sflag [#allocation7], %s247_s2 }
  0x66   : > { %s251_s5 = scalar_lea.vmem [#allocation6], %s611_s13  ;;  %p1340_p5 = scmp.ne.s32.totalorder %s1322_s27, 0 }
  0x68   : > { %931 = dma.done.wait (%p1340_p5), %s248_s15, 256  }
  0x69   : > { %933 = vsyncadd (%p1340_p5), %s248_s15, 4294967040  ;;  %p1341_p10 = scmp.eq.s32.totalorder %s1073_s26, 0 }
  0x6b   : > { %935 = dma.done.wait (%p1341_p10), [#allocation7], 512   ;;  %p1342_p3 = pmov %p1341_p10 }
  0x6c   : > { %s1220_s30 = scalar_lea.vmem [#allocation9], %s610_s12  ;;  %p614_p12 = scmp.ne.s32.totalorder %s968_s21, 0 }
  0x6d   : > { %937 = vsyncadd (%p1342_p3), [#allocation7], 4294966784  ;;  %s1343_s8 = sld [smem:[#allocation23_spill]] (!%p614_p12) }
  0x6e   : > { %288 = sbr.rel (%p614_p12) target bundleno = 322 (0x142), region = 52 }
  0x73   : > { %v294_v0 = vld [vmem:[#allocation8 + $0x18] sm:$0xff]  ;;  %v293_v1 = vld [vmem:[#allocation8 + $0x10] sm:$0xff]  ;;  %vm302_vm0 = vcmask 261120   ;;  %v292_v3 = vld [vmem:[#allocation8 + $0x8] sm:$0xff] }
  0x74   : > { %634 = vmatprep.subr.mxu0 %v294_v0  ;;  %v289_v2 = vld [vmem:[%s251_s5] sm:$0xff]  ;;  %v290_v5 = vld [vmem:[%s251_s5 + $0x8] sm:$0xff] }
  0x75   : > { %635 = vmatpush3.msra.mxu0 %v294_v0  ;;  %642 = vmatprep.mubr.msk.f32.mxu0 %vm302_vm0, %v289_v2  ;;  %v291_v4 = vld [vmem:[#allocation8] sm:$0xff] }
  0x76   : > { %636 = vmatprep.subr.mxu0 %v293_v1  ;;  %v615_v6 = vld [vmem:[%s1343_s8] ss:$0 sm:$0xff] }
  0x77   : > { %637 = vmatpush3.msra.mxu0 %v293_v1 }
  0x78   : > { %638 = vmatprep.subr.mxu0 %v292_v3 }
  0x79   : > { %639 = vmatpush3.msra.mxu0 %v292_v3 }
  0x7a   : > { %640 = vmatprep.subr.mxu0 %v291_v4 }
  0x7b   : > { %641 = vmatpush3.msra.mxu0 %v291_v4 }
  0x7c   : > { %643 = vmatmul.mubr.msk.f32.vlgmr.msra.gmra.mxu0 %vm302_vm0, %v290_v5 }
 0x13c   : > { %v644_v7 = vpop.f32.mrf.mxu0 }
 0x13d   : > { %v381_v8 = vadd.f32 %v644_v7, %v615_v6 }
 0x13e   : > { %v375_v9 = vpop.f32.mrf.mxu0 }
 0x13f   : > { %385 = vst.msk [vmem:[#allocation2 + $0x8] sm:$0xff] %vm302_vm0, %v381_v8  ;;  %v376_v10 = vadd.f32 %v615_v6, %v375_v9 }
 0x141   : > { %384 = vst.msk [vmem:[#allocation2] sm:$0xff] %vm302_vm0, %v376_v10 }
 0x142 PF: > { %s1344_s4 = sld [smem:[#allocation14_spill]]  ;;  %v991_v12 = vmov 0.0   ;;  %vm992_vm1 = vmmov 0   ;;  %v386_v14 = vld [vmem:[%s1204_s11] sm:$0xff]  ;;  %vm389_vm2 = vcmask 130048   ;;  %s481_s3 = sshll.u32 %s1220_s30, 4  ;;  %s1239_s3 = int_to_ptr.vmem [resolvable:$true] %s481_s3 }
 0x143   : > { %645 = vmatprep.subr.mxu0 %v991_v12  ;;  %649 = vmatprep.mubr.msk.f32.mxu0 %vm992_vm1, %v991_v12  ;;  %s1345_s22 = sld [smem:[#allocation18_spill]]  ;;  %vm463_vm3 = vcmask 261120   ;;  %s466_s11 = scalar_lea.sflag [#allocation5], %s1200_s29 }
 0x144   : > { %s1346_s12 = sld [smem:[#allocation24_spill]]  ;;  %s856_s2 = scalar_lea.vmem %s1239_s3, 128 }
 0x145   : > { %p857_p8 = scmp.ne.s32.totalorder %s1239_s3, %s856_s2 }
 0x146   : > { %v388_v11 = vld [vmem:[#allocation2 + $0x8] sm:$0xff] }
 0x147   : > { %646 = vmatpush3.msra.mxu0 %v388_v11 }
 0x148   : > { %v387_v13 = vld [vmem:[#allocation2] sm:$0xff]  ;;  %647 = vmatprep.subr.mxu0 %v991_v12  ;;  %s620_s6 = sshll.u32 %s1344_s4, 1 }
 0x149   : > { %648 = vmatpush3.msra.mxu0 %v387_v13  ;;  %s477_s10 = sadd.s32 %s968_s21, %s620_s6  ;;  %p1347_p7 = scmp.ne.s32.totalorder %s1345_s22, 0 }
 0x14a   : > { %650 = vmatmul.mubr.msk.f32.vlgmr.msra.gmra.mxu0 %vm389_vm2, %v386_v14  ;;  %s621_s7 = sshll.u32 %s477_s10, 7  ;;  %s993_s21 = smov [#allocation9]  }
 0x14b   : > { %s1237_s9 = scalar_lea.hbm %s1346_s12, %s621_s7  ;;  %p858_p1 = pnand %p857_p8, %p1347_p7 }
 0x14c   : > { %s860_s28 = sshll.u32 %s993_s21, 4  ;;  %s861_s28 = int_to_ptr.vmem [resolvable:$false] %s860_s28 }
 0x14d   : > { %p859_p4 = pneg %p858_p1  ;;  %s862_s13 = scalar_lea.vmem %s861_s28, 256 }
 0x14e   : > { %p863_p13 = scmp.lt.s32.totalorder %s1239_s3, %s861_s28  ;;  %p864_p9 = scmp.lt.s32.totalorder %s862_s13, %s856_s2 }
 0x150   : > { %p865_p11 = por %p864_p9, %p863_p13 }
 0x152   : > { %p866_p6 = pnand %p865_p11, %p859_p4 }
 0x20a   : > { %v459_v15 = vpop.f32.mrf.mxu0 }
 0x20b   : > { %464 = vst.msk [vmem:[%s1220_s30] sm:$0xff] %vm463_vm3, %v459_v15 }
 0x20c   : > { %v651_v16 = vpop.f32.mrf.mxu0 }
 0x20d   : > { %869 = shalt.err (!%p866_p6)
}
 0x20e   : > { %s870_s15 = scalar_lea.hbm %s1237_s9, 128  ;;  %s874_s30 = scalar_lea.hbm %s1346_s12, 512 }
 0x20f   : > { %p871_p0 = scmp.ne.s32.totalorder %s1237_s9, %s870_s15  ;;  %p875_p10 = scmp.lt.s32.totalorder %s1237_s9, %s1346_s12 }
 0x210   : > { %p876_p3 = scmp.lt.s32.totalorder %s874_s30, %s870_s15 }
 0x211   : > { %p872_p2 = pnand %p871_p0, %p1347_p7 }
 0x212   : > { %p877_p12 = por %p876_p3, %p875_p10 }
 0x213   : > { %p873_p5 = pneg %p872_p2 }
 0x215   : > { %p878_p8 = pnand %p877_p12, %p873_p5 }
 0x217   : > { %881 = shalt.err (!%p878_p8)
}
 0x218   : > { %660 = dma.vmem_to_hbm [thread:$0]  (%p1347_p7), %s1239_s3, 128, %s1237_s9, %s466_s11  }
 0x219 PF: > { %p680_p1 = scmp.ge.s32.totalorder %s984_s25, 2  ;;  %s493_s8 = sand.u32 1, %s956_s18  }
 0x21a   : > { %p1348_p4 = scmp.ne.s32.totalorder %s1334_s14, 0  ;;  %s494_s4 = scalar_lea.sflag [#allocation5], %s493_s8 }
 0x21c   : > { %p674_p13 = pnand %p680_p1, %p1348_p4 }
 0x21e   : > { %p675_p9 = pneg %p674_p13 }
 0x220   : > { %939 = dma.done.wait (%p675_p9), %s494_s4, 128  }
 0x221   : > { %941 = vsyncadd (%p675_p9), %s494_s4, 4294967168  ;;  %s23_s25 = sadd.s32 1, %s984_s25   ;;  %s1349_s22 = sld [smem:[#allocation19_spill]] }
 0x222   : > { %p20_p11 = scmp.ge.s32.totalorder %s23_s25, 6   ;;  %s1350_s6 = sld [smem:[#allocation20_spill]] }
 0x223   : > { %s1351_s21 = sld [smem:[#allocation15_spill]]  ;;  %s1354_s15 = smov %s948_s16 }
 0x224   : > { %s1352_s23 = sld [smem:[#allocation16_spill]]  ;;  %s1355_s16 = smov %s952_s17 }
 0x225   : > { %s1353_s10 = sld [smem:[#allocation17_spill]]  ;;  %s1357_s18 = smov %s960_s19 }
 0x226   : > { %s1358_s19 = smov %s964_s20 }
 0x227   : > { %s1356_s17 = smov %s1349_s22  ;;  %s1360_s22 = smov %s980_s24 }
 0x228   : > { %s1359_s20 = smov %s1350_s6  ;;  %22 = sbr.rel (!%p20_p11) target bundleno = 16 (0x10), region = 102 }
 0x22b   : > { %s1361_s24 = smov %s1353_s10 }
 0x22d   :  { %499 = vsyncpa [#allocation4], 1 }
 0x22e   :  { %501 = vsyncpa [#allocation4 + $0x1], 1 }
 0x22f   :  { %502 = vsyncpa [#allocation7], 1 }
 0x230   :  { %504 = vsyncpa [#allocation7 + $0x1], 1 }
 0x231   :  { %505 = vsyncpa [#allocation5], 1 }
 0x232   :  { %507 = vsyncpa [#allocation5 + $0x1], 1 }

</bundles_post_ra>
